<compile_context>
chip_gen: v7x
topology: tpu7x:2x2x1
jax: 0.10.0
libtpu: 0.0.40
codegen_flags: <defaults>
</compile_context>

<pallas_src>
import functools

import jax
import jax.numpy as jnp
from jax.experimental import pallas as pl
from jax.experimental.pallas import tpu as pltpu

# ~8 MiB blocks: on v7x (3.2 TB/s) this keeps the ~0.35 us per-step overhead
# around ~10% of step time; double-buffered in+out (4x block = 32 MiB) still
# fits v7x's 64 MiB VMEM. v5e/v6e (128 MiB VMEM) are unaffected.
_TARGET_BLOCK_BYTES = 8 * 1024 * 1024
_VMEM_SLACK_BYTES = 2 * 1024 * 1024


def _sublane_multiple(dtype):
    # Sub-32-bit dtypes pack along sublanes: bf16 vreg is [16,128], int8/fp8 [32,128].
    itemsize = jnp.dtype(dtype).itemsize
    return {4: 8, 2: 16, 1: 32}.get(itemsize, 8)


def _clip_kernel(x_ref, o_ref, *, min_val, max_val):
    # min/max are static Python scalars (or None), mirroring torch.clip semantics:
    # min applied first, then max -- so min > max yields max, like torch; NaNs
    # propagate through maximum/minimum the same way.
    # TODO(synk): if bounds vary at runtime, pass them as SMEM scalars instead of
    # baking them in (avoids one recompile per distinct (min, max) pair).
    x = x_ref[...]
    if min_val is not None:
        x = jnp.maximum(x, jnp.asarray(min_val, dtype=x.dtype))
    if max_val is not None:
        x = jnp.minimum(x, jnp.asarray(max_val, dtype=x.dtype))
    o_ref[...] = x


def _pallas_clip_2d(x2d, min_val, max_val, donate=False):
    rows, width = x2d.shape
    dtype = x2d.dtype
    itemsize = jnp.dtype(dtype).itemsize
    sub = _sublane_multiple(dtype)

    if rows < 2 * sub:
        # Genuinely tiny: one block covering the whole slab (full-array dims are
        # exempt from the (8,128) block-shape constraint).
        row_tile = rows
    else:
        # Largest sublane-aligned row tile near _TARGET_BLOCK_BYTES ...
        row_tile = max((_TARGET_BLOCK_BYTES // (width * itemsize)) // sub * sub, sub)
        # ... but always keep >= 2 grid steps so the pipeline actually overlaps
        # (single-step grids serialize input DMA -> compute -> output DMA).
        half_rows = (rows + 1) // 2
        two_step_cap = max((half_rows // sub) * sub, sub)
        row_tile = min(row_tile, two_step_cap)

    grid = (pl.cdiv(rows, row_tile),)

    # Derive the VMEM budget from the real footprint: 2 double-buffered input
    # blocks + 2 output blocks + slack.  Never hardcode 32 MiB.
    block_bytes = row_tile * width * itemsize
    vmem_limit = max(4 * block_bytes + _VMEM_SLACK_BYTES, 8 * 1024 * 1024)

    n = rows * width
    cost = pl.CostEstimate(
        flops=2 * n,                       # a compare per bound per element
        transcendentals=0,
        bytes_accessed=2 * n * itemsize,   # one read + one write of the array
    )

    kernel = functools.partial(_clip_kernel, min_val=min_val, max_val=max_val)
    return pl.pallas_call(
        kernel,
        out_shape=jax.ShapeDtypeStruct((rows, width), dtype),
        grid_spec=pltpu.PrefetchScalarGridSpec(
            num_scalar_prefetch=0,
            grid=grid,
            in_specs=[pl.BlockSpec((row_tile, width), lambda i: (i, 0))],
            out_specs=pl.BlockSpec((row_tile, width), lambda i: (i, 0)),
        ),
        compiler_params=pltpu.CompilerParams(
            # TODO(synk): on v7x, confirm via xprof that this axis is sharded
            # across both TensorCores; switch to pltpu.CORE_PARALLEL if not.
            dimension_semantics=("parallel",),
            vmem_limit_bytes=int(vmem_limit),
        ),
        cost_estimate=cost,
        # In-place clip when the caller donates x: halves HBM footprint and
        # avoids defensive copies around the custom call.
        input_output_aliases=({0: 0} if donate else {}),
    )(x2d)


class RangeClipper:
    """JAX/Pallas port of the PyTorch RangeClipper module."""

    def __init__(self, min=None, max=None, is_only_final=True, donate_input=False):
        # TODO(synk): Tensor-valued (broadcasting) min/max bounds are not supported;
        # only static Python scalars / None (the common usage) are handled.
        self.min = min
        self.max = max
        self.is_only_final = is_only_final  # sampler-level flag; unused in forward
        self.donate_input = donate_input    # opt-in in-place clipping

    def __call__(self, x):
        if self.min is None and self.max is None:
            return x  # identical to the PyTorch early-return
        orig_shape = x.shape
        n = x.size
        if n == 0:
            return x

        # Zero-copy lane-dense 2-D view: widest width that divides n.
        for width in (1024, 512, 256, 128):
            if n % width == 0:
                x2d = x.reshape(n // width, width)
                y2d = _pallas_clip_2d(x2d, self.min, self.max,
                                      donate=self.donate_input)
                return y2d.reshape(orig_shape)

        # Rare fallback (flat length not a multiple of 128, i.e. small inputs):
        # XLA's fused elementwise clip is already roofline-bound here, and avoids
        # the 3x HBM traffic of a pad -> kernel -> slice round trip.
        return jnp.clip(x, self.min, self.max).astype(x.dtype)


if __name__ == "__main__":
    key = jax.random.PRNGKey(0)
    # Small NCHW-like input: batch=2, channels=4, spatial=16x16
    x = jax.random.normal(key, (2, 4, 16, 16), dtype=jnp.float32) * 3.0

    clipper = RangeClipper(min=-1.0, max=1.0, is_only_final=True)
    y = jax.block_until_ready(clipper(x))
    assert jnp.allclose(y, jnp.clip(x, -1.0, 1.0)), "mismatch vs reference clip"
    assert y.shape == x.shape and y.dtype == x.dtype

    # min-only clipping
    y_min = jax.block_until_ready(RangeClipper(min=0.0)(x))
    assert jnp.allclose(y_min, jnp.clip(x, 0.0, None))

    # max-only clipping
    y_max = jax.block_until_ready(RangeClipper(max=0.5)(x))
    assert jnp.allclose(y_max, jnp.clip(x, None, 0.5))

    # None/None path returns input unchanged
    y_id = jax.block_until_ready(RangeClipper()(x))
    assert jnp.allclose(y_id, x)

    # bf16 path (16-row sublane packing)
    xb = x.astype(jnp.bfloat16)
    yb = jax.block_until_ready(RangeClipper(min=-1.0, max=1.0)(xb))
    assert yb.dtype == jnp.bfloat16
    assert jnp.allclose(yb.astype(jnp.float32),
                        jnp.clip(xb, -1.0, 1.0).astype(jnp.float32))

    # ragged flat size (not a multiple of 128) -> jnp.clip fallback path
    xr = jax.random.normal(jax.random.PRNGKey(1), (3, 5, 37), dtype=jnp.float32) * 2.0
    yr = jax.block_until_ready(RangeClipper(min=-0.7, max=0.7)(xr))
    assert jnp.allclose(yr, jnp.clip(xr, -0.7, 0.7))

    # multi-block tiled path (>= 2 grid steps so the pipeline overlaps), 4 MiB f32
    xm = jax.random.normal(jax.random.PRNGKey(2), (8, 256, 512), dtype=jnp.float32) * 3.0
    ym = jax.block_until_ready(RangeClipper(min=-1.0, max=1.0)(xm))
    assert jnp.allclose(ym, jnp.clip(xm, -1.0, 1.0))

    # in-place (input_output_aliases) path; reference computed before the call,
    # and x_ip is not reused afterwards.
    x_ip = jax.random.normal(jax.random.PRNGKey(3), (4, 128, 512), dtype=jnp.float32) * 2.0
    expected_ip = jax.block_until_ready(jnp.clip(x_ip, -1.0, 1.0))
    y_ip = jax.block_until_ready(
        RangeClipper(min=-1.0, max=1.0, donate_input=True)(x_ip))
    assert jnp.allclose(y_ip, expected_ip)

    print("KERNEL_OK")
</pallas_src>

<mosaic_0001>
module attributes {stable_mosaic.version = 11 : i64} {
  func.func @_clip_kernel(%arg0: i32, %arg1: memref<2x1024xf32, #tpu.memory_space<vmem>>, %arg2: memref<2x1024xf32, #tpu.memory_space<vmem>>) attributes {dimension_semantics = [#tpu.dimension_semantics<parallel>], iteration_bounds = array<i64: 1>, scalar_prefetch = 0 : i64, scratch_operands = 0 : i64, tpu.core_type = #tpu.core_type<tc>, window_params = [{transform_indices = @transform_0, window_bounds = array<i64: 2, 1024>}, {transform_indices = @transform_1, window_bounds = array<i64: 2, 1024>}]} {
    %c0 = arith.constant 0 : index
    %c0_0 = arith.constant 0 : index
    %0 = vector.load %arg1[%c0, %c0_0] : memref<2x1024xf32, #tpu.memory_space<vmem>>, vector<2x1024xf32>
    %cst = arith.constant -1.000000e+00 : f32
    %1 = vector.broadcast %cst : f32 to vector<2x1024xf32>
    %2 = arith.maximumf %0, %1 : vector<2x1024xf32>
    %cst_1 = arith.constant 1.000000e+00 : f32
    %3 = vector.broadcast %cst_1 : f32 to vector<2x1024xf32>
    %4 = arith.minimumf %2, %3 : vector<2x1024xf32>
    %c0_2 = arith.constant 0 : index
    %c0_3 = arith.constant 0 : index
    %5 = vector.load %arg2[%c0_2, %c0_3] : memref<2x1024xf32, #tpu.memory_space<vmem>>, vector<2x1024xf32>
    tpu.vector_store %arg2[%c0_2, %c0_3], %4 {strides = array<i32>} : memref<2x1024xf32, #tpu.memory_space<vmem>>, vector<2x1024xf32>,
    return
  }
  func.func @transform_0(%arg0: i32) -> (i32, i32) {
    %c0_i32 = arith.constant 0 : i32
    %c0_i32_0 = arith.constant 0 : i32
    return %arg0, %c0_i32 : i32, i32
  }
  func.func @transform_1(%arg0: i32) -> (i32, i32) {
    %c0_i32 = arith.constant 0 : i32
    %c0_i32_0 = arith.constant 0 : i32
    return %arg0, %c0_i32 : i32, i32
  }
}

</mosaic_0001>

<bundles_post_ra>
// kernel: tpu_custom_call.1
= control target key start
LH: loop header
LB: loop body
LE: loop exit
PB: predicated region body
PF: predicated region fallthrough
CT: control target
= control target key end

     0   :  { %6 = vsyncpa [#allocation3], 0  ;;  %s132_s0 = inlined_call_operand.hbm [shape: f32[2,1024], index: 0, kind: input, shape index: {}]   ;;  %s133_s1 = inlined_call_operand.hbm [shape: f32[2,1024], index: 1, kind: output, shape index: {}]  }
   0x1   :  { %7 = vsyncpa [#allocation4], 0  ;;  %s96_s6 = smov [#allocation2]   ;;  %s48_s10 = scalar_lea.hbm %s132_s0, 256 }
   0x2   :  { %s14_s7 = sshll.u32 %s96_s6, 4  ;;  %p49_p0 = scmp.ne.s32.totalorder %s132_s0, %s48_s10  ;;  %s15_s7 = int_to_ptr.vmem [resolvable:$true] %s14_s7 }
   0x3   :  { %p52_p1 = scmp.lt.u32.totalorder %s48_s10, %s132_s0 }
   0x5   :  { %p54_p2 = pnand %p52_p1, %p49_p0 }
   0x7   :  { %57 = shalt.err (!%p54_p2)
}
   0x8   :  { %s58_s15 = scalar_lea.vmem %s15_s7, 256  ;;  %p63_p4 = scmp.lt.s32.totalorder %s15_s7, %s15_s7 }
   0x9   :  { %p59_p3 = scmp.ne.s32.totalorder %s15_s7, %s58_s15  ;;  %p64_p5 = scmp.lt.s32.totalorder %s58_s15, %s58_s15 }
   0xb   :  { %p65_p6 = por %p64_p5, %p63_p4 }
   0xd   :  { %p66_p7 = pnand %p65_p6, %p59_p3 }
   0xf   :  { %69 = shalt.err (!%p66_p7)
}
  0x10   :  { %17 = dma.hbm_to_vmem [thread:$0]  %s132_s0, 256, %s15_s7, [#allocation3]  }
  0x11   :  { %92 = dma.done.wait [#allocation3], 256  }
  0x12   :  { %93 = vsyncadd [#allocation3], 4294967040  ;;  %s97_s18 = smov [#allocation5]   ;;  %v21_v0 = vld [vmem:[#allocation2] sm:$0xff]  ;;  %v22_v1 = vld [vmem:[#allocation2 + $0x8] sm:$0xff] }
  0x13   :  { %s35_s19 = sshll.u32 %s97_s18, 4  ;;  %v44_v2 = vclamps-f32 %v21_v0, 1.0  ;;  %v45_v3 = vclamps-f32 %v22_v1, 1.0  ;;  %s36_s19 = int_to_ptr.vmem [resolvable:$true] %s35_s19 }
  0x14   :  { %s70_s20 = scalar_lea.vmem %s36_s19, 256  ;;  %p75_p9 = scmp.lt.s32.totalorder %s36_s19, %s36_s19 }
  0x15   :  { %27 = vst [vmem:[#allocation5] sm:$0xff] %v44_v2  ;;  %28 = vst [vmem:[#allocation5 + $0x8] sm:$0xff] %v45_v3  ;;  %p71_p8 = scmp.ne.s32.totalorder %s36_s19, %s70_s20  ;;  %p76_p10 = scmp.lt.s32.totalorder %s70_s20, %s70_s20 }
  0x17   :  { %p77_p11 = por %p76_p10, %p75_p9 }
  0x19   :  { %p78_p12 = pnand %p77_p11, %p71_p8 }
  0x1b   :  { %81 = shalt.err (!%p78_p12)
}
  0x1c   :  { %s82_s22 = scalar_lea.hbm %s133_s1, 256 }
  0x1d   :  { %p83_p13 = scmp.ne.s32.totalorder %s133_s1, %s82_s22  ;;  %p86_p0 = scmp.lt.u32.totalorder %s82_s22, %s133_s1 }
  0x1f   :  { %p88_p1 = pnand %p86_p0, %p83_p13 }
  0x21   :  { %91 = shalt.err (!%p88_p1)
}
  0x22   :  { %38 = dma.vmem_to_hbm [thread:$0]  %s36_s19, 256, %s133_s1, [#allocation4]  }
  0x23   :  { %94 = dma.done.wait [#allocation4], 256  }
  0x24   :  { %95 = vsyncadd [#allocation4], 4294967040 }
  0x25   :  { %42 = vsyncpa [#allocation3], 1 }
  0x26   :  { %43 = vsyncpa [#allocation4], 1 }

</bundles_post_ra>
